<compile_context>
chip_gen: v6e
topology: v6e:2x2x1
jax: 0.10.0
libtpu: 0.0.40
codegen_flags: <defaults>
</compile_context>

<pallas_src>
import math

import jax
import jax.numpy as jnp
from jax.experimental import pallas as pl
from jax.experimental.pallas import tpu as pltpu


# ----------------------------------------------------------------------------
# Pallas kernel: one (TM, D) tile of rows -> (TM, 1) stop logits.
# ----------------------------------------------------------------------------
def stop_prediction_kernel(x_ref, w_ref, b_ref, o_ref):
  # x_ref: (TM, D)   activation rows for this grid step
  # w_ref: (1, D)    Linear weight row (lane-dense, broadcast over rows)
  # b_ref: (1, 1)    Linear bias
  # o_ref: (TM, 1)   output logits
  x = x_ref[...].astype(jnp.float32)
  w = w_ref[...]                                   # (1, D), broadcasts over TM
  acc = jnp.sum(x * w, axis=-1, keepdims=True)     # VPU mul + XLU lane reduce
  o_ref[...] = (acc + b_ref[...]).astype(o_ref.dtype)


# ----------------------------------------------------------------------------
# Wrapper: flatten leading dims into M, tile M, single pallas_call.
# ----------------------------------------------------------------------------
def stop_prediction_forward(x, weight, bias, *, block_m=256):
  """x: (..., D), weight: (1, D) [PyTorch Linear.weight], bias: (1,)."""
  *lead, D = x.shape
  M = math.prod(lead) if lead else 1
  x2 = x.reshape(M, D)

  tm = min(block_m, M)                      # whole slab if it is small
  num_tiles = (M + tm - 1) // tm
  Mp = num_tiles * tm
  if Mp != M:                               # pad rows; padded rows are sliced off
    x2 = jnp.pad(x2, ((0, Mp - M), (0, 0)))

  w_row = weight.reshape(1, D).astype(jnp.float32)
  b11 = bias.reshape(1, 1).astype(jnp.float32)

  out = pl.pallas_call(
      stop_prediction_kernel,
      out_shape=jax.ShapeDtypeStruct((Mp, 1), x.dtype),
      grid=(num_tiles,),
      in_specs=[
          pl.BlockSpec((tm, D), lambda i: (i, 0)),
          pl.BlockSpec((1, D), lambda i: (0, 0)),
          pl.BlockSpec((1, 1), lambda i: (0, 0)),
      ],
      out_specs=pl.BlockSpec((tm, 1), lambda i: (i, 0)),
      compiler_params=pltpu.CompilerParams(
          dimension_semantics=("parallel",)),
  )(x2, w_row, b11)

  return out[:M].reshape(*lead, 1)


# ----------------------------------------------------------------------------
# Demo / verification.
# ----------------------------------------------------------------------------
if __name__ == "__main__":
  B, T = 2, 8
  D_MODEL = 1024          # module default d_model

  key = jax.random.PRNGKey(0)
  kx, kw, kb = jax.random.split(key, 3)
  x = jax.random.normal(kx, (B, T, D_MODEL), jnp.float32)
  weight = 0.05 * jax.random.normal(kw, (1, D_MODEL), jnp.float32)  # Linear.weight
  bias = 0.05 * jax.random.normal(kb, (1,), jnp.float32)            # Linear.bias

  out = stop_prediction_forward(x, weight, bias)
  out = jax.block_until_ready(out)

  ref = x @ weight.T + bias           # pure-JAX reference of nn.Linear(d_model, 1)
  assert out.shape == (B, T, 1)
  assert jnp.allclose(out, ref, atol=1e-4, rtol=1e-4), "mismatch vs reference"

  print("KERNEL_OK")
</pallas_src>

<mosaic_0001>
module attributes {stable_mosaic.version = 11 : i64} {
  func.func @stop_prediction_kernel(%arg0: i32, %arg1: memref<16x1024xf32, #tpu.memory_space<vmem>>, %arg2: memref<1x1024xf32, #tpu.memory_space<vmem>>, %arg3: memref<1x1xf32, #tpu.memory_space<vmem>>, %arg4: memref<16x1xf32, #tpu.memory_space<vmem>>) attributes {dimension_semantics = [#tpu.dimension_semantics<parallel>], iteration_bounds = array<i64: 1>, scalar_prefetch = 0 : i64, scratch_operands = 0 : i64, tpu.core_type = #tpu.core_type<tc>, window_params = [{transform_indices = @transform_0, window_bounds = array<i64: 16, 1024>}, {pipeline_mode = #tpu.pipeline_mode<synchronous>, transform_indices = @transform_1, window_bounds = array<i64: 1, 1024>}, {pipeline_mode = #tpu.pipeline_mode<synchronous>, transform_indices = @transform_2, window_bounds = array<i64: 1, 1>}, {transform_indices = @transform_3, window_bounds = array<i64: 16, 1>}]} {
    %c0 = arith.constant 0 : index
    %c0_0 = arith.constant 0 : index
    %0 = vector.load %arg1[%c0, %c0_0] : memref<16x1024xf32, #tpu.memory_space<vmem>>, vector<16x1024xf32>
    %c0_1 = arith.constant 0 : index
    %c0_2 = arith.constant 0 : index
    %1 = vector.load %arg2[%c0_1, %c0_2] : memref<1x1024xf32, #tpu.memory_space<vmem>>, vector<1x1024xf32>
    %2 = vector.broadcast %1 : vector<1x1024xf32> to vector<16x1024xf32>
    %3 = arith.mulf %0, %2 : vector<16x1024xf32>
    %cst = arith.constant dense<0.000000e+00> : vector<16xf32>
    %4 = vector.multi_reduction <add>, %3, %cst [1] : vector<16x1024xf32> to vector<16xf32>
    %5 = vector.shape_cast %4 : vector<16xf32> to vector<16x1xf32>
    %c0_3 = arith.constant 0 : index
    %c0_4 = arith.constant 0 : index
    %6 = vector.load %arg3[%c0_3, %c0_4] : memref<1x1xf32, #tpu.memory_space<vmem>>, vector<1x1xf32>
    %7 = vector.broadcast %6 : vector<1x1xf32> to vector<16x1xf32>
    %8 = arith.addf %5, %7 : vector<16x1xf32>
    %c0_5 = arith.constant 0 : index
    %c0_6 = arith.constant 0 : index
    %9 = vector.load %arg4[%c0_5, %c0_6] : memref<16x1xf32, #tpu.memory_space<vmem>>, vector<16x1xf32>
    tpu.vector_store %arg4[%c0_5, %c0_6], %8 {strides = array<i32>} : memref<16x1xf32, #tpu.memory_space<vmem>>, vector<16x1xf32>,
    return
  }
  func.func @transform_0(%arg0: i32) -> (i32, i32) {
    %c0_i32 = arith.constant 0 : i32
    %c0_i32_0 = arith.constant 0 : i32
    return %arg0, %c0_i32 : i32, i32
  }
  func.func @transform_1(%arg0: i32) -> (i32, i32) {
    %c0_i32 = arith.constant 0 : i32
    %c0_i32_0 = arith.constant 0 : i32
    %c0_i32_1 = arith.constant 0 : i32
    return %c0_i32, %c0_i32_0 : i32, i32
  }
  func.func @transform_2(%arg0: i32) -> (i32, i32) {
    %c0_i32 = arith.constant 0 : i32
    %c0_i32_0 = arith.constant 0 : i32
    %c0_i32_1 = arith.constant 0 : i32
    return %c0_i32, %c0_i32_0 : i32, i32
  }
  func.func @transform_3(%arg0: i32) -> (i32, i32) {
    %c0_i32 = arith.constant 0 : i32
    %c0_i32_0 = arith.constant 0 : i32
    return %arg0, %c0_i32 : i32, i32
  }
}

</mosaic_0001>

<bundles_post_ra>
// kernel: tpu_custom_call.1
= control target key start
LH: loop header
LB: loop body
LE: loop exit
PB: predicated region body
PF: predicated region fallthrough
CT: control target
= control target key end

     0   :  { %s240_s0 = inlined_call_operand.hbm [shape: f32[16,1024], index: 0, kind: input, shape index: {}]   ;;  %s241_s1 = inlined_call_operand.hbm [shape: f32[1,1024], index: 1, kind: input, shape index: {}]   ;;  %s242_s2 = inlined_call_operand.<no memory space> [shape: f32[1,1], index: 2, kind: input, shape index: {}]   ;;  %s243_s3 = inlined_call_operand.vmem [shape: f32[16,1], index: 3, kind: output, shape index: {}]  }
   0x1   :  { %v8_v0 = vstv %s242_s2 }
   0x2   :  { %9 = vst [vmem:[#allocation2] sm:$0x1] %v8_v0 }
   0x3   :  { %10 = vsyncpa [#allocation4], 0 }
   0x4   :  { %11 = vsyncpa [#allocation6], 0  ;;  %s201_s14 = smov [#allocation3]  }
   0x5   :  { %s17_s15 = sshll.u32 %s201_s14, 4  ;;  %s18_s15 = int_to_ptr.vmem [resolvable:$true] %s17_s15 }
   0x6   :  { %s165_s16 = scalar_lea.vmem %s18_s15, 2048  ;;  %p170_p1 = scmp.lt.s32.totalorder %s18_s15, %s18_s15 }
   0x7   :  { %p166_p0 = scmp.ne.s32.totalorder %s18_s15, %s165_s16  ;;  %p171_p2 = scmp.lt.s32.totalorder %s165_s16, %s165_s16 }
   0x9   :  { %p172_p3 = por %p171_p2, %p170_p1 }
   0xb   :  { %p173_p4 = pnand %p172_p3, %p166_p0 }
   0xd   :  { %176 = shalt.err (!%p173_p4)
}
   0xe   :  { %s202_s17 = smov 1024   ;;  %s203_s18 = smov 64  }
   0xf   :  { %23 = dma.hbm_to_vmem [thread:$0]  %s240_s0, 2048, %s18_s15, [#allocation4], %s202_s17, %s202_s17, %s203_s18  }
  0x10   :  { %s204_s2 = smov [#allocation5]  }
  0x11   :  { %s30_s21 = sshll.u32 %s204_s2, 4  ;;  %s31_s21 = int_to_ptr.vmem [resolvable:$true] %s30_s21 }
  0x12   :  { %s185_s22 = scalar_lea.vmem %s31_s21, 128  ;;  %p190_p6 = scmp.lt.s32.totalorder %s31_s21, %s31_s21 }
  0x13   :  { %p186_p5 = scmp.ne.s32.totalorder %s31_s21, %s185_s22  ;;  %p191_p7 = scmp.lt.s32.totalorder %s185_s22, %s185_s22 }
  0x15   :  { %p192_p8 = por %p191_p7, %p190_p6 }
  0x17   :  { %p193_p9 = pnand %p192_p8, %p186_p5 }
  0x19   :  { %196 = shalt.err (!%p193_p9)
}
  0x1a   :  { %33 = dma.hbm_to_vmem [thread:$0]  %s241_s1, 128, %s31_s21, [#allocation6]  }
  0x1b   :  { %197 = dma.done.wait [#allocation4], 2048  }
  0x1c   :  { %198 = vsyncadd [#allocation4], 4294965248 }
  0x1d   :  { %199 = dma.done.wait [#allocation6], 128  }
  0x1e   :  { %200 = vsyncadd [#allocation6], 4294967168  ;;  %v60_v1 = vlaneseq  ;;  %v42_v7 = vld [vmem:[#allocation3] sm:$0xff]  ;;  %v43_v9 = vld [vmem:[#allocation3 + $0x8] sm:$0xff]  ;;  %vm143_vm0 = vcmask 7168  }
  0x1f   :  { %v44_v10 = vld [vmem:[#allocation3 + $0x10] sm:$0xff]  ;;  %v58_v11 = vld [vmem:[#allocation5] sm:$0xff]  ;;  %v45_v13 = vld [vmem:[#allocation3 + $0x18] sm:$0xff] }
  0x20   :  { %v61_v2 = vshrl.u32 %v60_v1, 7  ;;  %v50_v19 = vld [vmem:[#allocation3 + $0x40] sm:$0xff]  ;;  %v51_v20 = vld [vmem:[#allocation3 + $0x48] sm:$0xff]  ;;  %v52_v21 = vld [vmem:[#allocation3 + $0x50] sm:$0xff] }
  0x21   :  { %v46_v26 = vld [vmem:[#allocation3 + $0x20] sm:$0xff]  ;;  %v53_v30 = vld [vmem:[#allocation3 + $0x58] sm:$0xff]  ;;  %v47_v35 = vld [vmem:[#allocation3 + $0x28] sm:$0xff] }
  0x22   :  { %v62_v3 = vsub.s32 0, %v61_v2  ;;  %v66_v4 = vsub.s32 1, %v61_v2  ;;  %v70_v5 = vsub.s32 2, %v61_v2  ;;  %v74_v6 = vsub.s32 3, %v61_v2  ;;  %v54_v37 = vld [vmem:[#allocation3 + $0x60] sm:$0xff]  ;;  %v48_v42 = vld [vmem:[#allocation3 + $0x30] sm:$0xff] }
  0x23   :  { %v78_v8 = vsub.s32 4, %v61_v2  ;;  %v82_v12 = vsub.s32 5, %v61_v2  ;;  %v86_v18 = vsub.s32 6, %v61_v2  ;;  %v90_v28 = vsub.s32 7, %v61_v2  ;;  %v55_v44 = vld [vmem:[#allocation3 + $0x68] sm:$0xff]  ;;  %v49_v49 = vld [vmem:[#allocation3 + $0x38] sm:$0xff] }
  0x24   :  { %v63_v14 = vrot.slane %v58_v11, %v62_v3  ;;  %v67_v15 = vrot.slane %v58_v11, %v66_v4  ;;  %v71_v16 = vrot.slane %v58_v11, %v70_v5  ;;  %v75_v17 = vrot.slane %v58_v11, %v74_v6  ;;  %v56_v50 = vld [vmem:[#allocation3 + $0x70] sm:$0xff]  ;;  %v57_v55 = vld [vmem:[#allocation3 + $0x78] sm:$0xff] }
  0x25   :  { %v79_v22 = vrot.slane %v58_v11, %v78_v8  ;;  %v83_v27 = vrot.slane %v58_v11, %v82_v12  ;;  %v87_v36 = vrot.slane %v58_v11, %v86_v18  ;;  %v91_v43 = vrot.slane %v58_v11, %v90_v28  ;;  %v152_v2 = vld [vmem:[#allocation2] ss:$0 sm:$0xff] }
  0x26   :  { %v100_v23 = vmul.f32 %v63_v14, %v42_v7  ;;  %v101_v24 = vmul.f32 %v67_v15, %v43_v9  ;;  %v102_v25 = vmul.f32 %v71_v16, %v44_v10  ;;  %v103_v29 = vmul.f32 %v75_v17, %v45_v13 }
  0x27   :  { %v108_v32 = vmul.f32 %v63_v14, %v50_v19  ;;  %v109_v33 = vmul.f32 %v67_v15, %v51_v20  ;;  %v110_v34 = vmul.f32 %v71_v16, %v52_v21  ;;  %v104_v38 = vmul.f32 %v79_v22, %v46_v26 }
  0x28   :  { %v116_v31 = vadd.f32 %v101_v24, %v100_v23  ;;  %v111_v40 = vmul.f32 %v75_v17, %v53_v30  ;;  %v105_v45 = vmul.f32 %v83_v27, %v47_v35  ;;  %v112_v47 = vmul.f32 %v79_v22, %v54_v37 }
  0x29   :  { %v125_v41 = vadd.f32 %v109_v33, %v108_v32  ;;  %v106_v51 = vmul.f32 %v87_v36, %v48_v42  ;;  %v113_v53 = vmul.f32 %v83_v27, %v55_v44  ;;  %v107_v56 = vmul.f32 %v91_v43, %v49_v49 }
  0x2a   :  { %v117_v39 = vadd.f32 %v116_v31, %v102_v25  ;;  %v114_v58 = vmul.f32 %v87_v36, %v56_v50  ;;  %v115_v61 = vmul.f32 %v91_v43, %v57_v55 }
  0x2b   :  { %v126_v48 = vadd.f32 %v125_v41, %v110_v34 }
  0x2c   :  { %v118_v46 = vadd.f32 %v117_v39, %v103_v29 }
  0x2d   :  { %v127_v54 = vadd.f32 %v126_v48, %v111_v40 }
  0x2e   :  { %v119_v52 = vadd.f32 %v118_v46, %v104_v38 }
  0x2f   :  { %v128_v59 = vadd.f32 %v127_v54, %v112_v47 }
  0x30   :  { %v120_v57 = vadd.f32 %v119_v52, %v105_v45 }
  0x31   :  { %v129_v62 = vadd.f32 %v128_v59, %v113_v53 }
  0x32   :  { %v121_v60 = vadd.f32 %v120_v57, %v106_v51 }
  0x33   :  { %v130_v0 = vadd.f32 %v129_v62, %v114_v58 }
  0x34   :  { %v122_v63 = vadd.f32 %v121_v60, %v107_v56 }
  0x35   :  { %v131_v1 = vadd.f32 %v130_v0, %v115_v61 }
  0x36   :  { %123 = vadd.xlane.f32.xlu0 %v122_v63 }
  0x3a   :  { %132 = vadd.xlane.f32.xlu0 %v131_v1 }
  0xbf   :  { %v124_v3 = vpop.xlane.xlu0 %123 }
  0xc0   :  { %v141_v4 = vadd.f32 %v152_v2, %v124_v3 }
  0xc2   :  { %144 = vst.msk [vmem:[%s243_s3] sm:$0xff] %vm143_vm0, %v141_v4 }
  0xc3   :  { %v133_v5 = vpop.xlane.xlu0 %132 }
  0xc4   :  { %v142_v6 = vadd.f32 %v152_v2, %v133_v5 }
  0xc6   :  { %145 = vst.msk [vmem:[%s243_s3 + $0x8] sm:$0xff] %vm143_vm0, %v142_v6 }
  0xc7   :  { %150 = vsyncpa [#allocation4], 1 }
  0xc8   :  { %151 = vsyncpa [#allocation6], 1 }

</bundles_post_ra>
